<compile_context>
chip_gen: v7x
topology: tpu7x:2x2x1
jax: 0.10.0
libtpu: 0.0.40
codegen_flags: <defaults>
</compile_context>

<pallas_src>
import functools

import numpy as np
import jax
import jax.numpy as jnp
from jax import lax
from jax.experimental import pallas as pl
from jax.experimental.pallas import tpu as pltpu


# ----------------------------------------------------------------------------
# Kernels
# ----------------------------------------------------------------------------
def _pe_add_kernel(x_ref, pe_ref, o_ref):
    # eval / p == 0 path: dropout is the identity  ->  out = x + pe
    # x_ref/o_ref: (bt, L, D) tile; pe_ref: (L, D) VMEM-resident block.
    o_ref[...] = x_ref[...] + pe_ref[...][None, :, :]


def _pe_add_dropout_kernel(x_ref, pe_ref, seed_ref, o_ref, *,
                           p, inv_keep, bt, L, D):
    # training path: out = inverted_dropout(x + pe, p)   (PyTorch nn.Dropout)
    y = x_ref[...] + pe_ref[...][None, :, :]

    # Counter-based hash PRNG on the *global* element index so the mask does
    # not depend on how the grid is tiled/sharded across TensorCores, and is
    # portable (plain jnp integer ops only -- no pltpu.prng_*).
    shape = (bt, L, D)
    b_i = lax.broadcasted_iota(jnp.int32, shape, 0)
    l_i = lax.broadcasted_iota(jnp.int32, shape, 1)
    d_i = lax.broadcasted_iota(jnp.int32, shape, 2)
    gid = ((pl.program_id(0) * bt + b_i) * L + l_i) * D + d_i

    # splitmix32 / lowbias32-style mixer; seed folded in pre-mix so different
    # seeds give decorrelated masks (no stream reuse across consecutive seeds).
    h = gid.astype(jnp.uint32) ^ (seed_ref[0].astype(jnp.uint32)
                                  * jnp.uint32(0x9E3779B9))
    h = h ^ (h >> 16)
    h = h * jnp.uint32(0x7FEB352D)
    h = h ^ (h >> 15)
    h = h * jnp.uint32(0x846CA68B)
    h = h ^ (h >> 16)

    # Top 24 bits -> uniform in [0, 1).  P(drop) = P(u < p) = p.
    u = (h >> 8).astype(jnp.int32).astype(jnp.float32) * np.float32(1.0 / (1 << 24))
    keep = u >= p
    o_ref[...] = jnp.where(keep, y * inv_keep, 0.0)


# ----------------------------------------------------------------------------
# Wrapper
# ----------------------------------------------------------------------------
def _pick_batch_tile(B, per_batch_bytes, target_bytes):
    """Batch tile giving ~target_bytes per array per grid step, with >=2 grid
    steps whenever B >= 2 so both v7x TensorCores get work."""
    bt = max(1, min(B, target_bytes // max(per_batch_bytes, 1)))
    if B > 1:
        bt = min(bt, (B + 1) // 2)
    return int(bt)


def positional_encoding_forward(x, pe, *, dropout_p=0.1, training=False,
                                seed=0, target_block_bytes=2 << 20,
                                xla_small_input_bytes=0):
    """dropout(x + pe[:L], p) with the PyTorch PositionalEncoding forward
    semantics (identity dropout when training=False or p == 0).

    x:  (B, L, D) float32
    pe: (max_len, D) float32 sinusoidal buffer, L <= max_len
    """
    B, L, D = x.shape
    assert L <= pe.shape[0] and D == pe.shape[1]
    x = x.astype(jnp.float32)
    pe_l = pe[:L].astype(jnp.float32)                    # (L, D), ~L*D*4 bytes

    apply_dropout = bool(training) and dropout_p > 0.0
    if apply_dropout and dropout_p >= 1.0:
        # PyTorch nn.Dropout(p=1.0): everything dropped (avoid 1/(1-p)=inf).
        return jnp.zeros_like(x)

    # Optional escape hatch: for tiny activations (the module's default regime
    # is a few 100 KiB) XLA's fused x + pe (+ dropout) is already at roofline
    # and pallas_call launch overhead dominates.  Disabled by default here so
    # the demo below always exercises the Pallas kernel.
    if x.size * 4 <= xla_small_input_bytes:
        y = x + pe_l[None]
        if apply_dropout:
            keep = jax.random.bernoulli(jax.random.PRNGKey(seed),
                                        1.0 - dropout_p, y.shape)
            y = jnp.where(keep, y / (1.0 - dropout_p), 0.0)
        return y

    per_batch_bytes = L * D * 4
    bt = _pick_batch_tile(B, per_batch_bytes, target_block_bytes)
    grid = (pl.cdiv(B, bt),)

    # x / out: (bt, L, D) tiles marching over the batch.  pe: full (L, D)
    # block with a constant index_map -> DMA'd into VMEM once and reused.
    x_spec = pl.BlockSpec((bt, L, D), lambda b: (b, 0, 0))
    pe_spec = pl.BlockSpec((L, D), lambda b: (0, 0))
    out_spec = pl.BlockSpec((bt, L, D), lambda b: (b, 0, 0))

    cparams = pltpu.CompilerParams(
        dimension_semantics=("parallel",),
        vmem_limit_bytes=32 * 1024 * 1024)   # ~2 MiB x 2 arrays x 2 buffers used

    out_shape = jax.ShapeDtypeStruct((B, L, D), jnp.float32)

    if not apply_dropout:
        out = pl.pallas_call(
            _pe_add_kernel,
            out_shape=out_shape,
            grid=grid,
            in_specs=[x_spec, pe_spec],
            out_specs=out_spec,
            input_output_aliases={0: 0},      # reuse x's buffer for the output
            compiler_params=cparams,
        )(x, pe_l)
    else:
        seed_arr = jnp.asarray([seed], dtype=jnp.int32)
        seed_spec = pl.BlockSpec(memory_space=pltpu.MemorySpace.SMEM)
        kernel = functools.partial(
            _pe_add_dropout_kernel,
            p=np.float32(dropout_p),
            inv_keep=np.float32(1.0 / (1.0 - dropout_p)),
            bt=bt, L=L, D=D)
        out = pl.pallas_call(
            kernel,
            out_shape=out_shape,
            grid=grid,
            in_specs=[x_spec, pe_spec, seed_spec],
            out_specs=out_spec,
            input_output_aliases={0: 0},
            compiler_params=cparams,
        )(x, pe_l, seed_arr)

    return out


# ----------------------------------------------------------------------------
# Sinusoidal PE buffer (same construction as the PyTorch module __init__)
# ----------------------------------------------------------------------------
def make_sinusoidal_pe(max_len, d_model):
    pos = jnp.arange(max_len, dtype=jnp.float32)[:, None]
    div = jnp.exp(jnp.arange(0, d_model, 2, dtype=jnp.float32)
                  * (-np.log(10000.0) / d_model))
    pe = jnp.zeros((max_len, d_model), jnp.float32)
    pe = pe.at[:, 0::2].set(jnp.sin(pos * div))
    pe = pe.at[:, 1::2].set(jnp.cos(pos * div))
    return pe


# ----------------------------------------------------------------------------
if __name__ == "__main__":
    d_model = 256
    max_len = 30
    dropout_p = 0.1            # module default

    key = jax.random.PRNGKey(0)
    k1, k2 = jax.random.split(key)

    pe = make_sinusoidal_pe(max_len, d_model)

    # ---- small eval-mode check ----
    B, L = 2, 12
    x = jax.random.normal(k1, (B, L, d_model), jnp.float32)
    fwd_eval = jax.jit(functools.partial(positional_encoding_forward,
                                         dropout_p=dropout_p, training=False))
    out = jax.block_until_ready(fwd_eval(x, pe))
    ref = x + pe[:L][None]
    assert out.shape == (B, L, d_model), out.shape
    np.testing.assert_allclose(np.asarray(out), np.asarray(ref),
                               rtol=1e-6, atol=1e-6)

    # ---- larger eval-mode check (multi-step "parallel" grid, resident pe) ----
    B2, L2 = 64, 16
    xb = jax.random.normal(k2, (B2, L2, d_model), jnp.float32)
    outb = jax.block_until_ready(fwd_eval(xb, pe))
    refb = xb + pe[:L2][None]
    np.testing.assert_allclose(np.asarray(outb), np.asarray(refb),
                               rtol=1e-6, atol=1e-6)

    # ---- training-mode check (stochastic inverted dropout) ----
    fwd_train = jax.jit(functools.partial(positional_encoding_forward,
                                          dropout_p=dropout_p, training=True,
                                          seed=123))
    out_t = np.asarray(jax.block_until_ready(fwd_train(x, pe)))
    ref_np = np.asarray(ref)
    scaled = ref_np / (1.0 - dropout_p)
    matches = np.isclose(out_t, scaled, rtol=1e-5, atol=1e-5) | (out_t == 0.0)
    assert matches.all()
    drop_frac = float((out_t == 0.0).mean())
    assert 0.03 < drop_frac < 0.22, drop_frac
    assert np.isfinite(out_t).all()

    print("KERNEL_OK")
</pallas_src>

<mosaic_0001>
module attributes {stable_mosaic.version = 11 : i64} {
  func.func @_pe_add_kernel(%arg0: i32, %arg1: memref<1x12x256xf32, #tpu.memory_space<vmem>>, %arg2: memref<12x256xf32, #tpu.memory_space<vmem>>, %arg3: memref<1x12x256xf32, #tpu.memory_space<vmem>>) attributes {dimension_semantics = [#tpu.dimension_semantics<parallel>], iteration_bounds = array<i64: 2>, scalar_prefetch = 0 : i64, scratch_operands = 0 : i64, tpu.core_type = #tpu.core_type<tc>, window_params = [{transform_indices = @transform_0, window_bounds = array<i64: 1, 12, 256>}, {pipeline_mode = #tpu.pipeline_mode<synchronous>, transform_indices = @transform_1, window_bounds = array<i64: 12, 256>}, {transform_indices = @transform_2, window_bounds = array<i64: 1, 12, 256>}]} {
    %c0 = arith.constant 0 : index
    %c0_0 = arith.constant 0 : index
    %c0_1 = arith.constant 0 : index
    %0 = vector.load %arg1[%c0, %c0_0, %c0_1] : memref<1x12x256xf32, #tpu.memory_space<vmem>>, vector<1x12x256xf32>
    %c0_2 = arith.constant 0 : index
    %c0_3 = arith.constant 0 : index
    %1 = vector.load %arg2[%c0_2, %c0_3] : memref<12x256xf32, #tpu.memory_space<vmem>>, vector<12x256xf32>
    %2 = vector.shape_cast %1 : vector<12x256xf32> to vector<1x12x256xf32>
    %3 = arith.addf %0, %2 : vector<1x12x256xf32>
    %c0_4 = arith.constant 0 : index
    %c0_5 = arith.constant 0 : index
    %c0_6 = arith.constant 0 : index
    %4 = vector.load %arg3[%c0_4, %c0_5, %c0_6] : memref<1x12x256xf32, #tpu.memory_space<vmem>>, vector<1x12x256xf32>
    tpu.vector_store %arg3[%c0_4, %c0_5, %c0_6], %3 {strides = array<i32>} : memref<1x12x256xf32, #tpu.memory_space<vmem>>, vector<1x12x256xf32>,
    return
  }
  func.func @transform_0(%arg0: i32) -> (i32, i32, i32) {
    %c0_i32 = arith.constant 0 : i32
    %c0_i32_0 = arith.constant 0 : i32
    %c0_i32_1 = arith.constant 0 : i32
    return %arg0, %c0_i32, %c0_i32_0 : i32, i32, i32
  }
  func.func @transform_1(%arg0: i32) -> (i32, i32) {
    %c0_i32 = arith.constant 0 : i32
    %c0_i32_0 = arith.constant 0 : i32
    %c0_i32_1 = arith.constant 0 : i32
    return %c0_i32, %c0_i32_0 : i32, i32
  }
  func.func @transform_2(%arg0: i32) -> (i32, i32, i32) {
    %c0_i32 = arith.constant 0 : i32
    %c0_i32_0 = arith.constant 0 : i32
    %c0_i32_1 = arith.constant 0 : i32
    return %arg0, %c0_i32, %c0_i32_0 : i32, i32, i32
  }
}

</mosaic_0001>

<bundles_post_ra>
// kernel: positional_encoding_forward.1
= control target key start
LH: loop header
LB: loop body
LE: loop exit
PB: predicated region body
PF: predicated region fallthrough
CT: control target
= control target key end

     0   :  { %s259_s9 = smov 0   ;;  %s288_s0 = inlined_call_operand.vmem [shape: f32[2,12,256], index: 0, kind: input, shape index: {}, may-alias: {0,2}]   ;;  %s289_s1 = inlined_call_operand.vmem [shape: f32[12,256], index: 1, kind: input, shape index: {}]   ;;  %s290_s2 = inlined_call_operand.vmem [shape: f32[2,12,256], index: 2, kind: output, shape index: {}, may-alias: {0,2}]  }
   0x1 LB: > { %s215_s10 = sadd.s32 4294967295, %s242_s9   ;;  %p219_p0 = scmp.ge.s32.totalorder %s242_s9, 1  ;;  %s242_s9 = sphi %s259_s9, %s12_s9  }
   0x2   : > { %p112_p1 = scmp.lt.s32.totalorder %s242_s9, 3 }
   0x4   : > { %p113_p2 = pnand %p219_p0, %p112_p1 }
   0x5   : > { %p134_p3 = scmp.lt.s32.totalorder (!%p113_p2), %s215_s10, 1  ;;  %v148_v0 = vld [vmem:[%s289_s1] sm:$0xff] (!%p113_p2)  ;;  %v149_v1 = vld [vmem:[%s289_s1 + $0x8] sm:$0xff] (!%p113_p2)  ;;  %v150_v2 = vld [vmem:[%s289_s1 + $0x10] sm:$0xf] (!%p113_p2) }
   0x6   : > { %116 = sbr.rel (%p113_p2) target bundleno = 21 (0x15), region = 28  ;;  %v151_v3 = vld [vmem:[%s289_s1 + $0x18] sm:$0xf] (!%p113_p2) }
   0xd   : > { %s292_s10 = smov (!%p134_p3, %s215_s10), 1 }
   0xe   : > { %s226_s11 = sshll.u32 %s292_s10, 5 }
   0xf   : > { %s138_s20 = scalar_lea.vmem %s288_s0, %s226_s11  ;;  %s143_s25 = scalar_lea.vmem %s290_s2, %s226_s11 }
  0x10   : > { %v144_v4 = vld [vmem:[%s138_s20] sm:$0xff]  ;;  %v145_v5 = vld [vmem:[%s138_s20 + $0x8] sm:$0xff]  ;;  %v146_v6 = vld [vmem:[%s138_s20 + $0x10] sm:$0xf] }
  0x11   : > { %v147_v7 = vld [vmem:[%s138_s20 + $0x18] sm:$0xf]  ;;  %v152_v8 = vadd.f32 %v148_v0, %v144_v4  ;;  %v153_v9 = vadd.f32 %v149_v1, %v145_v5  ;;  %v154_v10 = vadd.f32 %v150_v2, %v146_v6 }
  0x12   : > { %v155_v11 = vadd.f32 %v151_v3, %v147_v7 }
  0x13   : > { %156 = vst [vmem:[%s143_s25] sm:$0xff] %v152_v8  ;;  %157 = vst [vmem:[%s143_s25 + $0x8] sm:$0xff] %v153_v9 }
  0x14   : > { %158 = vst [vmem:[%s143_s25 + $0x10] sm:$0xf] %v154_v10  ;;  %159 = vst [vmem:[%s143_s25 + $0x18] sm:$0xf] %v155_v11 }
  0x15 PF: > { %s12_s9 = sadd.s32 1, %s242_s9  }
  0x16   : > { %p9_p4 = scmp.ge.s32.totalorder %s12_s9, 4  }
  0x18   :  { %11 = sbr.rel (!%p9_p4) target bundleno = 1 (0x1), region = 58 }

</bundles_post_ra>
